<compile_context>
chip_gen: v7x
topology: tpu7x:2x2x1
jax: 0.10.0
libtpu: 0.0.40
codegen_flags: <defaults>
</compile_context>

<pallas_src>
import jax
import jax.numpy as jnp
from jax.experimental import pallas as pl
from jax.experimental.pallas import tpu as pltpu

BN_EPS = 1e-5


# ----------------------------------------------------------------------------
# Fused kernel: [drug1 | drug2 | proj(cell)] -> Linear -> ReLU -> BN
#                                            -> Linear -> ReLU -> BN -> Linear
# Whole (small) batch is resident in VMEM; the stack projection is pre-folded
# into the cell slice of W1 (see prepare_params), so layer 1 is three dots
# with no activation concat.
# ----------------------------------------------------------------------------
def fused_dnn_kernel(d1_ref, d2_ref, cellf_ref,
                     w1a_ref, w1b_ref, w1c_ref, b1_ref, g1_ref, be1_ref,
                     w2_ref, b2_ref, g2_ref, be2_ref,
                     w3_ref, b3_ref, out_ref):
    bf16 = jnp.bfloat16
    f32 = jnp.float32

    def batchnorm(x, g, b):
        mu = jnp.mean(x, axis=0, keepdims=True)
        var = jnp.mean((x - mu) ** 2, axis=0, keepdims=True)  # biased var (training fwd)
        return (x - mu) * jax.lax.rsqrt(var + BN_EPS) * g + b

    # ---- Layer 1: concat-free [drug1 | drug2 | proj(cell)] @ W1 + b1 -------
    h = jnp.dot(d1_ref[...].astype(bf16), w1a_ref[...], preferred_element_type=f32)
    h = h + jnp.dot(d2_ref[...].astype(bf16), w1b_ref[...], preferred_element_type=f32)
    h = h + jnp.dot(cellf_ref[...].astype(bf16), w1c_ref[...], preferred_element_type=f32)
    h = jnp.maximum(h + b1_ref[...], 0.0)
    h = batchnorm(h, g1_ref[...], be1_ref[...])

    # ---- Layer 2: Linear -> ReLU -> BatchNorm -------------------------------
    h2 = jnp.dot(h.astype(bf16), w2_ref[...], preferred_element_type=f32)
    h2 = jnp.maximum(h2 + b2_ref[...], 0.0)
    h2 = batchnorm(h2, g2_ref[...], be2_ref[...])

    # ---- Output head (tiny (H2, 1) matmul, keep f32) ------------------------
    out = jnp.dot(h2, w3_ref[...], preferred_element_type=f32) + b3_ref[...]
    out_ref[...] = out.astype(out_ref.dtype)
    # TODO(synk): BatchNorm running-stat (momentum) updates are training-only
    # state, not part of the returned forward value; not emitted.


def fused_forward(drug1, drug2, cell_flat, prepared):
    (w1a, w1b, w1c, b1, g1, be1, w2, b2, g2, be2, w3, b3) = prepared
    B, D = drug1.shape
    SC = cell_flat.shape[1]
    H = w1a.shape[1]
    H2 = w2.shape[1]

    flops = 2 * B * (2 * D * H + SC * H + H * H2 + H2)
    bytes_accessed = (
        4 * (drug1.size + drug2.size + cell_flat.size + B)       # f32 activations + out
        + 2 * (w1a.size + w1b.size + w1c.size + w2.size)         # bf16 weights
        + 4 * (b1.size + g1.size + be1.size + b2.size + g2.size + be2.size
               + w3.size + b3.size))
    cost = pl.CostEstimate(flops=flops, transcendentals=H + H2,
                           bytes_accessed=bytes_accessed)

    vmem = pl.BlockSpec(memory_space=pltpu.MemorySpace.VMEM)
    args = (drug1, drug2, cell_flat,
            w1a, w1b, w1c, b1, g1, be1, w2, b2, g2, be2, w3, b3)

    # TODO(synk): at production sizes (large B / hidden), tile layer 1 over the
    # hidden dim with a "parallel" grid axis (BN stats are per-column, so
    # N-tiling is exact) to fit v7x's 64 MiB VMEM and use both TensorCores.
    return pl.pallas_call(
        fused_dnn_kernel,
        out_shape=jax.ShapeDtypeStruct((B, 1), jnp.float32),
        in_specs=[vmem] * len(args),
        out_specs=vmem,
        compiler_params=pltpu.CompilerParams(vmem_limit_bytes=32 * 1024 * 1024),
        cost_estimate=cost,
    )(*args)


# ----------------------------------------------------------------------------
# One-time parameter repack (per weight update, not per forward call):
#   * fold the stack projection into the cell block of W1,
#   * split W1 so no activation concat is needed,
#   * pre-cast MXU-facing weights to bf16 (f32 accumulation in-kernel).
# ----------------------------------------------------------------------------
def prepare_params(projectors, mlp_params, drug_size):
    (w1, b1, g1, be1, w2, b2, g2, be2, w3, b3) = mlp_params
    S, C, _ = projectors.shape
    D = drug_size
    bf16 = jnp.bfloat16

    # w_stack rows are P[s].T stacked along the S axis: (S*C, C)
    w_stack = jnp.transpose(projectors, (0, 2, 1)).reshape(S * C, C)
    w1_cell_fold = (w_stack @ w1[2 * D:]).astype(bf16)           # (S*C, H)

    return (w1[:D].astype(bf16), w1[D:2 * D].astype(bf16), w1_cell_fold,
            b1, g1, be1,
            w2.astype(bf16), b2, g2, be2,
            w3, b3)


@jax.jit
def stack_proj_dnn_forward(drug1, drug2, cell, prepared):
    B = drug1.shape[0]
    cell_flat = cell.reshape(B, -1)   # contiguous (B,S,C) -> (B,S*C): free merge
    return fused_forward(drug1, drug2, cell_flat, prepared)


# ----------------------------------------------------------------------------
# Deterministic parameter init (shapes from StackProjDNN.__init__)
# ----------------------------------------------------------------------------
def init_params(key, drug_size, cell_size, stack_size, hidden_size):
    feat_size = 2 * drug_size + cell_size
    H, H2 = hidden_size, hidden_size // 2
    ks = jax.random.split(key, 4)

    gain = 1.414  # xavier_uniform_ gain used in the PyTorch module
    bound_p = gain * (6.0 / (cell_size + cell_size)) ** 0.5
    projectors = jax.random.uniform(
        ks[0], (stack_size, cell_size, cell_size), jnp.float32, -bound_p, bound_p)

    def lin(k, fin, fout):
        kw, kb = jax.random.split(k)
        bound = 1.0 / (fin ** 0.5)
        w = jax.random.uniform(kw, (fin, fout), jnp.float32, -bound, bound)
        b = jax.random.uniform(kb, (1, fout), jnp.float32, -bound, bound)
        return w, b

    w1, b1 = lin(ks[1], feat_size, H)
    w2, b2 = lin(ks[2], H, H2)
    w3, b3 = lin(ks[3], H2, 1)
    g1, be1 = jnp.ones((1, H), jnp.float32), jnp.zeros((1, H), jnp.float32)
    g2, be2 = jnp.ones((1, H2), jnp.float32), jnp.zeros((1, H2), jnp.float32)
    return projectors, (w1, b1, g1, be1, w2, b2, g2, be2, w3, b3)


# ----------------------------------------------------------------------------
# Pure-JAX f32 reference (mirrors the PyTorch forward) for correctness checks.
# ----------------------------------------------------------------------------
def reference_forward(drug1, drug2, cell, projectors, mlp_params):
    (w1, b1, g1, be1, w2, b2, g2, be2, w3, b3) = mlp_params
    cell_sum = jnp.einsum('sck,bsk->bc', projectors, cell)
    feat = jnp.concatenate([drug1, drug2, cell_sum], axis=1)

    def bn(x, g, b):
        mu = jnp.mean(x, axis=0, keepdims=True)
        var = jnp.mean((x - mu) ** 2, axis=0, keepdims=True)
        return (x - mu) / jnp.sqrt(var + BN_EPS) * g + b

    h = jnp.maximum(feat @ w1 + b1, 0.0)
    h = bn(h, g1, be1)
    h2 = jnp.maximum(h @ w2 + b2, 0.0)
    h2 = bn(h2, g2, be2)
    return h2 @ w3 + b3


if __name__ == "__main__":
    B, drug_size, cell_size, stack_size, hidden_size = 16, 16, 32, 4, 32

    key = jax.random.PRNGKey(0)
    k_d1, k_d2, k_cell, k_params = jax.random.split(key, 4)
    drug1 = jax.random.normal(k_d1, (B, drug_size), jnp.float32)
    drug2 = jax.random.normal(k_d2, (B, drug_size), jnp.float32)
    cell = jax.random.normal(k_cell, (B, stack_size, cell_size), jnp.float32)

    projectors, mlp_params = init_params(
        k_params, drug_size, cell_size, stack_size, hidden_size)

    prepared = jax.block_until_ready(
        prepare_params(projectors, mlp_params, drug_size))

    out = stack_proj_dnn_forward(drug1, drug2, cell, prepared)
    out = jax.block_until_ready(out)

    ref = reference_forward(drug1, drug2, cell, projectors, mlp_params)
    assert out.shape == (B, 1), out.shape
    # bf16 MXU operands (f32 accumulate) vs. a pure-f32 reference -> looser tol.
    assert jnp.allclose(out, ref, atol=5e-2, rtol=5e-2), (
        float(jnp.max(jnp.abs(out - ref))))
    print("KERNEL_OK")
</pallas_src>

<mosaic_0001>
module attributes {stable_mosaic.version = 11 : i64} {
  func.func @fused_dnn_kernel(%arg0: memref<16x16xf32, #tpu.memory_space<vmem>>, %arg1: memref<16x16xf32, #tpu.memory_space<vmem>>, %arg2: memref<16x128xf32, #tpu.memory_space<vmem>>, %arg3: memref<16x32xbf16, #tpu.memory_space<vmem>>, %arg4: memref<16x32xbf16, #tpu.memory_space<vmem>>, %arg5: memref<128x32xbf16, #tpu.memory_space<vmem>>, %arg6: memref<1x32xf32, #tpu.memory_space<vmem>>, %arg7: memref<1x32xf32, #tpu.memory_space<vmem>>, %arg8: memref<1x32xf32, #tpu.memory_space<vmem>>, %arg9: memref<32x16xbf16, #tpu.memory_space<vmem>>, %arg10: memref<1x16xf32, #tpu.memory_space<vmem>>, %arg11: memref<1x16xf32, #tpu.memory_space<vmem>>, %arg12: memref<1x16xf32, #tpu.memory_space<vmem>>, %arg13: memref<16x1xf32, #tpu.memory_space<vmem>>, %arg14: memref<1x1xf32, #tpu.memory_space<vmem>>, %arg15: memref<16x1xf32, #tpu.memory_space<vmem>>) attributes {dimension_semantics = [], scalar_prefetch = 0 : i64, scratch_operands = 0 : i64, tpu.core_type = #tpu.core_type<tc>} {
    %c0 = arith.constant 0 : index
    %c0_0 = arith.constant 0 : index
    %0 = vector.load %arg0[%c0, %c0_0] : memref<16x16xf32, #tpu.memory_space<vmem>>, vector<16x16xf32>
    %1 = arith.truncf %0 : vector<16x16xf32> to vector<16x16xbf16>
    %c0_1 = arith.constant 0 : index
    %c0_2 = arith.constant 0 : index
    %2 = vector.load %arg3[%c0_1, %c0_2] : memref<16x32xbf16, #tpu.memory_space<vmem>>, vector<16x32xbf16>
    %cst = arith.constant dense<0.000000e+00> : vector<16x32xf32>
    %3 = tpu.matmul %1, %2, %cst {dimension_numbers = #tpu.dot_dimension_numbers<[1], [0], [0], [1], [0, 0, 1, 1], [], []>} : vector<16x16xbf16>, vector<16x32xbf16>, vector<16x32xf32> -> vector<16x32xf32>
    %c0_3 = arith.constant 0 : index
    %c0_4 = arith.constant 0 : index
    %4 = vector.load %arg1[%c0_3, %c0_4] : memref<16x16xf32, #tpu.memory_space<vmem>>, vector<16x16xf32>
    %5 = arith.truncf %4 : vector<16x16xf32> to vector<16x16xbf16>
    %c0_5 = arith.constant 0 : index
    %c0_6 = arith.constant 0 : index
    %6 = vector.load %arg4[%c0_5, %c0_6] : memref<16x32xbf16, #tpu.memory_space<vmem>>, vector<16x32xbf16>
    %cst_7 = arith.constant dense<0.000000e+00> : vector<16x32xf32>
    %7 = tpu.matmul %5, %6, %cst_7 {dimension_numbers = #tpu.dot_dimension_numbers<[1], [0], [0], [1], [0, 0, 1, 1], [], []>} : vector<16x16xbf16>, vector<16x32xbf16>, vector<16x32xf32> -> vector<16x32xf32>
    %8 = arith.addf %3, %7 : vector<16x32xf32>
    %c0_8 = arith.constant 0 : index
    %c0_9 = arith.constant 0 : index
    %9 = vector.load %arg2[%c0_8, %c0_9] : memref<16x128xf32, #tpu.memory_space<vmem>>, vector<16x128xf32>
    %10 = arith.truncf %9 : vector<16x128xf32> to vector<16x128xbf16>
    %c0_10 = arith.constant 0 : index
    %c0_11 = arith.constant 0 : index
    %11 = vector.load %arg5[%c0_10, %c0_11] : memref<128x32xbf16, #tpu.memory_space<vmem>>, vector<128x32xbf16>
    %cst_12 = arith.constant dense<0.000000e+00> : vector<16x32xf32>
    %12 = tpu.matmul %10, %11, %cst_12 {dimension_numbers = #tpu.dot_dimension_numbers<[1], [0], [0], [1], [0, 0, 1, 1], [], []>} : vector<16x128xbf16>, vector<128x32xbf16>, vector<16x32xf32> -> vector<16x32xf32>
    %13 = arith.addf %8, %12 : vector<16x32xf32>
    %c0_13 = arith.constant 0 : index
    %c0_14 = arith.constant 0 : index
    %14 = vector.load %arg6[%c0_13, %c0_14] : memref<1x32xf32, #tpu.memory_space<vmem>>, vector<1x32xf32>
    %15 = vector.broadcast %14 : vector<1x32xf32> to vector<16x32xf32>
    %16 = arith.addf %13, %15 : vector<16x32xf32>
    %cst_15 = arith.constant 0.000000e+00 : f32
    %17 = vector.broadcast %cst_15 : f32 to vector<16x32xf32>
    %18 = arith.maximumf %16, %17 : vector<16x32xf32>
    %c0_16 = arith.constant 0 : index
    %c0_17 = arith.constant 0 : index
    %19 = vector.load %arg7[%c0_16, %c0_17] : memref<1x32xf32, #tpu.memory_space<vmem>>, vector<1x32xf32>
    %c0_18 = arith.constant 0 : index
    %c0_19 = arith.constant 0 : index
    %20 = vector.load %arg8[%c0_18, %c0_19] : memref<1x32xf32, #tpu.memory_space<vmem>>, vector<1x32xf32>
    %cst_20 = arith.constant dense<0.000000e+00> : vector<32xf32>
    %21 = vector.multi_reduction <add>, %18, %cst_20 [0] : vector<16x32xf32> to vector<32xf32>
    %22 = vector.shape_cast %21 : vector<32xf32> to vector<1x32xf32>
    %cst_21 = arith.constant 1.600000e+01 : f32
    %23 = vector.broadcast %cst_21 : f32 to vector<1x32xf32>
    %24 = arith.divf %22, %23 : vector<1x32xf32>
    %25 = vector.broadcast %24 : vector<1x32xf32> to vector<16x32xf32>
    %26 = arith.subf %18, %25 : vector<16x32xf32>
    %27 = arith.mulf %26, %26 : vector<16x32xf32>
    %cst_22 = arith.constant dense<0.000000e+00> : vector<32xf32>
    %28 = vector.multi_reduction <add>, %27, %cst_22 [0] : vector<16x32xf32> to vector<32xf32>
    %29 = vector.shape_cast %28 : vector<32xf32> to vector<1x32xf32>
    %cst_23 = arith.constant 1.600000e+01 : f32
    %30 = vector.broadcast %cst_23 : f32 to vector<1x32xf32>
    %31 = arith.divf %29, %30 : vector<1x32xf32>
    %32 = vector.broadcast %24 : vector<1x32xf32> to vector<16x32xf32>
    %33 = arith.subf %18, %32 : vector<16x32xf32>
    %cst_24 = arith.constant 9.99999974E-6 : f32
    %34 = vector.broadcast %cst_24 : f32 to vector<1x32xf32>
    %35 = arith.addf %31, %34 : vector<1x32xf32>
    %36 = math.rsqrt %35 : vector<1x32xf32>
    %37 = vector.broadcast %36 : vector<1x32xf32> to vector<16x32xf32>
    %38 = arith.mulf %33, %37 : vector<16x32xf32>
    %39 = vector.broadcast %19 : vector<1x32xf32> to vector<16x32xf32>
    %40 = arith.mulf %38, %39 : vector<16x32xf32>
    %41 = vector.broadcast %20 : vector<1x32xf32> to vector<16x32xf32>
    %42 = arith.addf %40, %41 : vector<16x32xf32>
    %43 = arith.truncf %42 : vector<16x32xf32> to vector<16x32xbf16>
    %c0_25 = arith.constant 0 : index
    %c0_26 = arith.constant 0 : index
    %44 = vector.load %arg9[%c0_25, %c0_26] : memref<32x16xbf16, #tpu.memory_space<vmem>>, vector<32x16xbf16>
    %cst_27 = arith.constant dense<0.000000e+00> : vector<16x16xf32>
    %45 = tpu.matmul %43, %44, %cst_27 {dimension_numbers = #tpu.dot_dimension_numbers<[1], [0], [0], [1], [0, 0, 1, 1], [], []>} : vector<16x32xbf16>, vector<32x16xbf16>, vector<16x16xf32> -> vector<16x16xf32>
    %c0_28 = arith.constant 0 : index
    %c0_29 = arith.constant 0 : index
    %46 = vector.load %arg10[%c0_28, %c0_29] : memref<1x16xf32, #tpu.memory_space<vmem>>, vector<1x16xf32>
    %47 = vector.broadcast %46 : vector<1x16xf32> to vector<16x16xf32>
    %48 = arith.addf %45, %47 : vector<16x16xf32>
    %cst_30 = arith.constant 0.000000e+00 : f32
    %49 = vector.broadcast %cst_30 : f32 to vector<16x16xf32>
    %50 = arith.maximumf %48, %49 : vector<16x16xf32>
    %c0_31 = arith.constant 0 : index
    %c0_32 = arith.constant 0 : index
    %51 = vector.load %arg11[%c0_31, %c0_32] : memref<1x16xf32, #tpu.memory_space<vmem>>, vector<1x16xf32>
    %c0_33 = arith.constant 0 : index
    %c0_34 = arith.constant 0 : index
    %52 = vector.load %arg12[%c0_33, %c0_34] : memref<1x16xf32, #tpu.memory_space<vmem>>, vector<1x16xf32>
    %cst_35 = arith.constant dense<0.000000e+00> : vector<16xf32>
    %53 = vector.multi_reduction <add>, %50, %cst_35 [0] : vector<16x16xf32> to vector<16xf32>
    %54 = vector.shape_cast %53 : vector<16xf32> to vector<1x16xf32>
    %cst_36 = arith.constant 1.600000e+01 : f32
    %55 = vector.broadcast %cst_36 : f32 to vector<1x16xf32>
    %56 = arith.divf %54, %55 : vector<1x16xf32>
    %57 = vector.broadcast %56 : vector<1x16xf32> to vector<16x16xf32>
    %58 = arith.subf %50, %57 : vector<16x16xf32>
    %59 = arith.mulf %58, %58 : vector<16x16xf32>
    %cst_37 = arith.constant dense<0.000000e+00> : vector<16xf32>
    %60 = vector.multi_reduction <add>, %59, %cst_37 [0] : vector<16x16xf32> to vector<16xf32>
    %61 = vector.shape_cast %60 : vector<16xf32> to vector<1x16xf32>
    %cst_38 = arith.constant 1.600000e+01 : f32
    %62 = vector.broadcast %cst_38 : f32 to vector<1x16xf32>
    %63 = arith.divf %61, %62 : vector<1x16xf32>
    %64 = vector.broadcast %56 : vector<1x16xf32> to vector<16x16xf32>
    %65 = arith.subf %50, %64 : vector<16x16xf32>
    %cst_39 = arith.constant 9.99999974E-6 : f32
    %66 = vector.broadcast %cst_39 : f32 to vector<1x16xf32>
    %67 = arith.addf %63, %66 : vector<1x16xf32>
    %68 = math.rsqrt %67 : vector<1x16xf32>
    %69 = vector.broadcast %68 : vector<1x16xf32> to vector<16x16xf32>
    %70 = arith.mulf %65, %69 : vector<16x16xf32>
    %71 = vector.broadcast %51 : vector<1x16xf32> to vector<16x16xf32>
    %72 = arith.mulf %70, %71 : vector<16x16xf32>
    %73 = vector.broadcast %52 : vector<1x16xf32> to vector<16x16xf32>
    %74 = arith.addf %72, %73 : vector<16x16xf32>
    %c0_40 = arith.constant 0 : index
    %c0_41 = arith.constant 0 : index
    %75 = vector.load %arg13[%c0_40, %c0_41] : memref<16x1xf32, #tpu.memory_space<vmem>>, vector<16x1xf32>
    %cst_42 = arith.constant dense<0.000000e+00> : vector<16x1xf32>
    %76 = tpu.matmul %74, %75, %cst_42 {dimension_numbers = #tpu.dot_dimension_numbers<[1], [0], [0], [1], [0, 0, 1, 1], [], []>} : vector<16x16xf32>, vector<16x1xf32>, vector<16x1xf32> -> vector<16x1xf32>
    %c0_43 = arith.constant 0 : index
    %c0_44 = arith.constant 0 : index
    %77 = vector.load %arg14[%c0_43, %c0_44] : memref<1x1xf32, #tpu.memory_space<vmem>>, vector<1x1xf32>
    %78 = vector.broadcast %77 : vector<1x1xf32> to vector<16x1xf32>
    %79 = arith.addf %76, %78 : vector<16x1xf32>
    %c0_45 = arith.constant 0 : index
    %c0_46 = arith.constant 0 : index
    %80 = vector.load %arg15[%c0_45, %c0_46] : memref<16x1xf32, #tpu.memory_space<vmem>>, vector<16x1xf32>
    tpu.vector_store %arg15[%c0_45, %c0_46], %79 {strides = array<i32>} : memref<16x1xf32, #tpu.memory_space<vmem>>, vector<16x1xf32>,
    return
  }
}

</mosaic_0001>

<bundles_post_ra>
// kernel: stack_proj_dnn_forward.1
= control target key start
LH: loop header
LB: loop body
LE: loop exit
PB: predicated region body
PF: predicated region fallthrough
CT: control target
= control target key end

     0   :  { %v659_v0 = vmov 0.0   ;;  %vm660_vm0 = vmmov 0   ;;  %vm69_vm1 = vcmask 130048   ;;  %vm287_vm2 = vcmask 261120   ;;  %s845_s5 = inlined_call_operand.vmem [shape: bf16[128,32], index: 5, kind: input, shape index: {}]   ;;  %s846_s4 = inlined_call_operand.vmem [shape: bf16[16,32], index: 4, kind: input, shape index: {}]   ;;  %s847_s1 = inlined_call_operand.vmem [shape: f32[16,16], index: 1, kind: input, shape index: {}]   ;;  %s848_s3 = inlined_call_operand.vmem [shape: bf16[16,32], index: 3, kind: input, shape index: {}]   ;;  %s849_s0 = inlined_call_operand.vmem [shape: f32[16,16], index: 0, kind: input, shape index: {}]   ;;  %s850_s2 = inlined_call_operand.vmem [shape: f32[16,128], index: 2, kind: input, shape index: {}]   ;;  %s851_s9 = inlined_call_operand.vmem [shape: bf16[32,16], index: 9, kind: input, shape index: {}]   ;;  %s852_s6 = inlined_call_operand.vmem [shape: f32[1,32], index: 6, kind: input, shape index: {}]   ;;  %s853_s7 = inlined_call_operand.vmem [shape: f32[1,32], index: 7, kind: input, shape index: {}]   ;;  %s854_s8 = inlined_call_operand.vmem [shape: f32[1,32], index: 8, kind: input, shape index: {}]   ;;  %s855_s13 = inlined_call_operand.vmem [shape: f32[16,1], index: 13, kind: input, shape index: {}]   ;;  %s856_s14 = inlined_call_operand.<no memory space> [shape: f32[1,1], index: 14, kind: input, shape index: {}]   ;;  %s857_s10 = inlined_call_operand.vmem [shape: f32[1,16], index: 10, kind: input, shape index: {}]   ;;  %s858_s11 = inlined_call_operand.vmem [shape: f32[1,16], index: 11, kind: input, shape index: {}]   ;;  %s859_s12 = inlined_call_operand.vmem [shape: f32[1,16], index: 12, kind: input, shape index: {}]   ;;  %s860_s15 = inlined_call_operand.vmem [shape: f32[16,1], index: 15, kind: output, shape index: {}]  }
   0x1   :  { %602 = vmatprep.subr.bf16.mxu0 %v659_v0  ;;  %v643_v1 = vld [vmem:[%s845_s5] sm:$0xff]   ;;  %590 = vmatprep.subr.bf16.mxu1 %v659_v0  ;;  %v644_v2 = vld [vmem:[%s845_s5 + $0x8] sm:$0xff]   ;;  %v646_v6 = vld [vmem:[%s845_s5 + $0x10] sm:$0xff]   ;;  %vm539_vm3 = vcmask 7168  }
   0x2   :  { %592 = vmatprep.mubr.msk.bf16.mxu1 %vm660_vm0, %v659_v0  ;;  %618 = vmatprep.mubr.msk.bf16.mxu0 %vm660_vm0, %v659_v0  ;;  %v645_v3 = vld [vmem:[%s846_s4] sm:$0xff]   ;;  %v59_v5 = vld [vmem:[%s847_s1 + $0x8] sm:$0xff]  ;;  %v647_v11 = vld [vmem:[%s845_s5 + $0x18] sm:$0xff]  }
   0x3   :  { %603 = vmatpush3.bf16.msra.mxu0 %v643_v1  ;;  %591 = vmatpush3.bf16.msra.mxu1 %v645_v3  ;;  %v58_v4 = vld [vmem:[%s847_s1] sm:$0xff]  ;;  %v54_v10 = vld [vmem:[%s849_s0 + $0x8] sm:$0xff]  ;;  %v651_v15 = vld [vmem:[%s845_s5 + $0x30] sm:$0xff]  }
   0x4   :  { %604 = vmatprep.subr.bf16.mxu0 %v659_v0  ;;  %v60_v7 = vpack.c.bf16 %v59_v5, %v58_v4  ;;  %596 = vmatprep.subr.bf16.mxu1 %v659_v0  ;;  %v648_v8 = vld [vmem:[%s848_s3] sm:$0xff]   ;;  %v650_v14 = vld [vmem:[%s845_s5 + $0x28] sm:$0xff]   ;;  %v652_v16 = vld [vmem:[%s845_s5 + $0x38] sm:$0xff]  }
   0x5   :  { %v53_v9 = vld [vmem:[%s849_s0] sm:$0xff]  ;;  %v165_v18 = vld [vmem:[%s850_s2 + $0x8] sm:$0xff] }
   0x6   :  { %593 = vmatmul.mubr.msk.bf16.vlgmr.msra.gmra.mrb[0].mxu1 %vm69_vm1, %v60_v7  ;;  %v55_v12 = vpack.c.bf16 %v54_v10, %v53_v9  ;;  %v649_v13 = vld [vmem:[%s845_s5 + $0x20] sm:$0xff]   ;;  %v654_v21 = vld [vmem:[%s851_s9 + $0x8] sm:$0xff]  }
   0x7   :  { %605 = vmatpush3.bf16.msra.mxu0 %v644_v2  ;;  %597 = vmatpush3.bf16.msra.mxu1 %v648_v8  ;;  %v164_v17 = vld [vmem:[%s850_s2] sm:$0xff] }
   0x8   :  { %606 = vmatprep.subr.bf16.mxu0 %v659_v0  ;;  %598 = vmatprep.mubr.msk.bf16.mxu1 %vm660_vm0, %v659_v0  ;;  %v166_v19 = vpack.c.bf16 %v165_v18, %v164_v17  ;;  %v653_v20 = vld [vmem:[%s851_s9] sm:$0xff]   ;;  %v20_v17 = vstv %s856_s14 }
   0x9   :  { %622 = vmatprep.subr.bf16.mxu1 %v659_v0  ;;  %v558_v33 = vld [vmem:[%s852_s6] ss:$0 sm:$0xff]  ;;  %21 = vst [vmem:[#allocation2] sm:$0x1] %v20_v17 }
   0xa   :  { %v559_v5 = vld [vmem:[%s853_s7] ss:$0 sm:$0xff] }
   0xb   :  { %607 = vmatpush3.bf16.msra.mxu0 %v646_v6  ;;  %v560_v8 = vld [vmem:[%s854_s8] ss:$0 sm:$0xff] }
   0xc   :  { %608 = vmatprep.subr.bf16.mxu0 %v659_v0  ;;  %v561_v18 = vld [vmem:[%s857_s10] ss:$0 sm:$0xff] }
   0xe   :  { %599 = vmatmul.mubr.msk.bf16.vlgmr.msra.gmra.mrb[4].mxu1 %vm69_vm1, %v55_v12 }
   0xf   :  { %609 = vmatpush3.bf16.msra.mxu0 %v647_v11  ;;  %626 = vmatprep.mubr.msk.bf16.mxu1 %vm660_vm0, %v659_v0 }
  0x10   :  { %610 = vmatprep.subr.bf16.mxu0 %v659_v0  ;;  %623 = vmatpush3.bf16.msra.mxu1 %v653_v20 }
  0x11   :  { %624 = vmatprep.subr.bf16.mxu1 %v659_v0 }
  0x13   :  { %611 = vmatpush3.bf16.msra.mxu0 %v649_v13 }
  0x14   :  { %612 = vmatprep.subr.bf16.mxu0 %v659_v0  ;;  %625 = vmatpush3.bf16.msra.mxu1 %v654_v21 }
  0x17   :  { %613 = vmatpush3.bf16.msra.mxu0 %v650_v14  ;;  %v449_v14 = vld [vmem:[%s855_s13] sm:$0xff] }
  0x18   :  { %614 = vmatprep.subr.bf16.mxu0 %v659_v0 }
  0x1b   :  { %615 = vmatpush3.bf16.msra.mxu0 %v651_v15  ;;  %v450_v15 = vld [vmem:[%s855_s13 + $0x8] sm:$0xff] }
  0x1c   :  { %616 = vmatprep.subr.bf16.mxu0 %v659_v0 }
  0x1f   :  { %617 = vmatpush3.bf16.msra.mxu0 %v652_v16  ;;  %v637_v16 = vpack.c.bf16 %v450_v15, %v449_v14 }
  0x21   :  { %638 = vmatprep.subr.bf16.mxu1 %v637_v16 }
  0x22   :  { %619 = vmatmul.mubr.bf16.vlgmr.msra.gmra.mrb[0].mxu0 %v166_v19 }
  0xd9   :  { %v107_v22 = vpop.f32.mrb[0].mxu1 }
  0xda   :  { %v594_v23 = vpop.f32.mrb[1].mxu1 }
  0xdb   :  { %v110_v24 = vpop.f32.mrb[2].mxu1 }
  0xdc   :  { %v595_v25 = vpop.f32.mrb[3].mxu1 }
  0xe1   :  { %v157_v26 = vpop.f32.mrb[4].mxu1 }
  0xe2   :  { %v158_v27 = vadd.f32 %v157_v26, %v107_v22  ;;  %v600_v28 = vpop.f32.mrb[5].mxu1 }
  0xe3   :  { %v160_v29 = vpop.f32.mrb[6].mxu1 }
  0xe4   :  { %v161_v30 = vadd.f32 %v160_v29, %v110_v24  ;;  %v601_v31 = vpop.f32.mrb[7].mxu1 }
  0xf5   :  { %v265_v32 = vpop.f32.mrb[0].mxu0 }
  0xf6   :  { %v272_v34 = vadd.f32 %v265_v32, %v158_v27  ;;  %v620_v35 = vpop.f32.mrb[1].mxu0 }
  0xf7   :  { %v268_v36 = vpop.f32.mrb[2].mxu0 }
  0xf8   :  { %v281_v37 = vadd.f32 %v558_v33, %v272_v34  ;;  %v273_v38 = vadd.f32 %v268_v36, %v161_v30  ;;  %v621_v39 = vpop.f32.mrb[3].mxu0 }
  0xfa   :  { %v283_v40 = vmax.f32 %v281_v37, 0.0  ;;  %v282_v41 = vadd.f32 %v558_v33, %v273_v38 }
  0xfc   :  { %v284_v42 = vmax.f32 %v282_v41, 0.0  ;;  %v288_v43 = vsel %vm287_vm2, %v283_v40, 0.0 }
  0xfe   :  { %v289_v44 = vsel %vm287_vm2, %v284_v42, 0.0 }
  0xff   :  { %v290_v45 = vadd.f32 %v289_v44, %v288_v43 }
 0x101   :  { %v291_v46 = vrot.slane %v290_v45, 4 }
 0x103   :  { %v292_v47 = vadd.f32 %v291_v46, %v290_v45 }
 0x105   :  { %v293_v48 = vrot.slane %v292_v47, 2 }
 0x107   :  { %v294_v49 = vadd.f32 %v293_v48, %v292_v47 }
 0x109   :  { %v295_v50 = vrot.slane %v294_v49, 1 }
 0x10b   :  { %v296_v51 = vadd.f32 %v295_v50, %v294_v49 }
 0x10d   :  { %v298_v52 = vmul.f32 0.0625, %v296_v51 }
 0x10f   :  { %v299_v53 = vsub.f32 %v283_v40, %v298_v52  ;;  %v300_v54 = vsub.f32 %v284_v42, %v298_v52 }
 0x111   :  { %v301_v55 = vmul.f32 %v299_v53, %v299_v53  ;;  %v302_v56 = vmul.f32 %v300_v54, %v300_v54 }
 0x113   :  { %v303_v57 = vsel %vm287_vm2, %v301_v55, 0.0  ;;  %v304_v58 = vsel %vm287_vm2, %v302_v56, 0.0  ;;  %v566_v56 = vld [vmem:[%s859_s12] ss:$0 sm:$0xff] }
 0x114   :  { %v305_v59 = vadd.f32 %v304_v58, %v303_v57 }
 0x116   :  { %v306_v60 = vrot.slane %v305_v59, 4 }
 0x118   :  { %v307_v61 = vadd.f32 %v306_v60, %v305_v59 }
 0x11a   :  { %v308_v62 = vrot.slane %v307_v61, 2 }
 0x11c   :  { %v309_v63 = vadd.f32 %v308_v62, %v307_v61  ;;  %v567_v61 = vld [vmem:[#allocation2] ss:$0 sm:$0xff] }
 0x11e   :  { %v310_v0 = vrot.slane %v309_v63, 1 }
 0x120   :  { %v311_v1 = vadd.f32 %v310_v0, %v309_v63 }
 0x122   :  { %v312_v2 = vmul.f32 0.0625, %v311_v1 }
 0x124   :  { %v313_v3 = vadd.f32 1e-05, %v312_v2 }
 0x126   :  { %655 = vrsqrt.f32 %v313_v3 }
 0x130   :  { %v656_v4 = vpop.eup %655 }
 0x131   :  { %v315_v6 = vmul.f32 %v656_v4, %v299_v53  ;;  %v316_v7 = vmul.f32 %v656_v4, %v300_v54  ;;  %v565_v53 = vld [vmem:[%s858_s11] ss:$0 sm:$0xff] }
 0x133   :  { %v323_v9 = vmul.f32 %v559_v5, %v315_v6  ;;  %v324_v10 = vmul.f32 %v559_v5, %v316_v7 }
 0x135   :  { %v331_v11 = vadd.f32 %v560_v8, %v323_v9  ;;  %v332_v12 = vadd.f32 %v560_v8, %v324_v10 }
 0x137   :  { %v333_v13 = vpack.c.bf16 %v332_v12, %v331_v11 }
 0x139   :  { %627 = vmatmul.mubr.msk.bf16.vlgmr.msra.gmra.mrb[8].mxu1 %vm287_vm2, %v333_v13 }
 0x13a   :  { %640 = vmatpush3.bf16.msra.mxu1 %v637_v16 }
 0x20c   :  { %v394_v19 = vpop.f32.mrb[8].mxu1 }
 0x20d   :  { %v395_v20 = vadd.f32 %v561_v18, %v394_v19  ;;  %v628_v21 = vpop.f32.mrb[9].mxu1 }
 0x20e   :  { %v397_v22 = vpop.f32.mrb[10].mxu1 }
 0x20f   :  { %v401_v23 = vmax.f32 %v395_v20, 0.0  ;;  %v398_v24 = vadd.f32 %v561_v18, %v397_v22  ;;  %v629_v25 = vpop.f32.mrb[11].mxu1 }
 0x211   :  { %v402_v26 = vmax.f32 %v398_v24, 0.0  ;;  %v405_v27 = vsel %vm69_vm1, %v401_v23, 0.0 }
 0x213   :  { %v406_v28 = vsel %vm69_vm1, %v402_v26, 0.0 }
 0x214   :  { %v407_v29 = vadd.f32 %v406_v28, %v405_v27 }
 0x216   :  { %v408_v30 = vrot.slane %v407_v29, 4 }
 0x218   :  { %v409_v31 = vadd.f32 %v408_v30, %v407_v29 }
 0x21a   :  { %v410_v32 = vrot.slane %v409_v31, 2 }
 0x21c   :  { %v411_v33 = vadd.f32 %v410_v32, %v409_v31 }
 0x21e   :  { %v412_v34 = vrot.slane %v411_v33, 1 }
 0x220   :  { %v413_v35 = vadd.f32 %v412_v34, %v411_v33 }
 0x222   :  { %v414_v36 = vmul.f32 0.0625, %v413_v35 }
 0x224   :  { %v415_v37 = vsub.f32 %v401_v23, %v414_v36  ;;  %v416_v38 = vsub.f32 %v402_v26, %v414_v36 }
 0x226   :  { %v417_v39 = vmul.f32 %v415_v37, %v415_v37  ;;  %v418_v40 = vmul.f32 %v416_v38, %v416_v38 }
 0x228   :  { %v419_v41 = vsel %vm69_vm1, %v417_v39, 0.0  ;;  %v420_v42 = vsel %vm69_vm1, %v418_v40, 0.0 }
 0x229   :  { %v421_v43 = vadd.f32 %v420_v42, %v419_v41 }
 0x22b   :  { %v422_v44 = vrot.slane %v421_v43, 4 }
 0x22d   :  { %v423_v45 = vadd.f32 %v422_v44, %v421_v43 }
 0x22f   :  { %v424_v46 = vrot.slane %v423_v45, 2 }
 0x231   :  { %v425_v47 = vadd.f32 %v424_v46, %v423_v45 }
 0x233   :  { %v426_v48 = vrot.slane %v425_v47, 1 }
 0x235   :  { %v427_v49 = vadd.f32 %v426_v48, %v425_v47 }
 0x237   :  { %v428_v50 = vmul.f32 0.0625, %v427_v49 }
 0x239   :  { %v429_v51 = vadd.f32 1e-05, %v428_v50 }
 0x23b   :  { %657 = vrsqrt.f32 %v429_v51 }
 0x245   :  { %v658_v52 = vpop.eup %657 }
 0x246   :  { %v431_v54 = vmul.f32 %v658_v52, %v415_v37  ;;  %v432_v55 = vmul.f32 %v658_v52, %v416_v38 }
 0x248   :  { %v439_v57 = vmul.f32 %v565_v53, %v431_v54  ;;  %v440_v58 = vmul.f32 %v565_v53, %v432_v55 }
 0x24a   :  { %v447_v59 = vadd.f32 %v566_v56, %v439_v57  ;;  %v448_v60 = vadd.f32 %v566_v56, %v440_v58 }
 0x24c   :  { %634 = vmatprep.mubr.msk.f32.mxu1 %vm69_vm1, %v447_v59 }
 0x24d   :  { %635 = vmatmul.mubr.msk.f32.vlgmr.msra.gmra.mrb[12].mxu1 %vm69_vm1, %v448_v60 }
 0x320   :  { %v636_v62 = vpop.f32.mrb[12].mxu1 }
 0x321   :  { %v536_v63 = vadd.f32 %v636_v62, %v567_v61  ;;  %v530_v0 = vpop.f32.mrb[13].mxu1 }
 0x322   :  { %v531_v1 = vadd.f32 %v567_v61, %v530_v0 }
 0x323   :  { %541 = vst.msk [vmem:[%s860_s15 + $0x8] sm:$0xff] %vm539_vm3, %v536_v63 }
 0x324   :  { %540 = vst.msk [vmem:[%s860_s15] sm:$0xff] %vm539_vm3, %v531_v1 }

</bundles_post_ra>
